<compile_context>
chip_gen: v7x
topology: tpu7x:2x2x1
jax: 0.10.0
libtpu: 0.0.40
codegen_flags: <defaults>
</compile_context>

<pallas_src>
import jax
import jax.numpy as jnp
from jax import lax
from jax.experimental import pallas as pl
from jax.experimental.pallas import tpu as pltpu

LANES = 128
SUBLANES = 8


def _round_up(x, m):
    return (x + m - 1) // m * m


def _tpu_vmem_capacity_bytes():
    """Per-core VMEM capacity; conservative fallback if the query fails."""
    try:
        return int(pltpu.get_tpu_info().vmem_capacity_bytes)
    except Exception:
        return 64 * 2**20  # v7x per-TensorCore size: safe lower bound


def _has_bf16_valu():
    """v6e/v7x have a bf16 VPU; v5e and earlier do not."""
    try:
        kind = jax.devices()[0].device_kind.lower()
    except Exception:
        return True
    return not any(tag in kind for tag in ("v2", "v3", "v4", "v5"))


def _block_spec(shape, index_map, buffers=None):
    """BlockSpec with an explicit pipeline buffer count (graceful fallback)."""
    if buffers is not None and hasattr(pl, "Buffered"):
        try:
            return pl.BlockSpec(shape, index_map,
                                pipeline_mode=pl.Buffered(buffers))
        except TypeError:
            pass
    return pl.BlockSpec(shape, index_map)


def make_mlp_kernel(use_bf16_eltwise):
    """Fused 4-layer MLP.  Activations are feature-major: (features, batch)."""
    elt = jnp.bfloat16 if use_bf16_eltwise else jnp.float32

    def kernel(x_ref, w1_ref, w2_ref, w3_ref, w4_ref, b_ref, o_ref):
        x = x_ref[...]                                  # bf16 (bt, d_p), batch-major

        b1 = b_ref[:, 0:1].astype(elt)                  # (h_p, 1)
        b2 = b_ref[:, 1:2].astype(elt)
        b3 = b_ref[:, 2:3].astype(elt)
        b4 = b_ref[0:1, 3:4]                            # (1, 1) f32

        # Layer 1: contract the feature axis of W1 (h_p, d_p) and the x tile
        # (bt, d_p) -> feature-major activations (h_p, bt).  No transpose of x
        # on the host or in the kernel.
        h = lax.dot_general(w1_ref[...], x, (((1,), (1,)), ((), ())),
                            preferred_element_type=jnp.float32)
        h = jnp.maximum(h.astype(elt) + b1, 0).astype(jnp.bfloat16)

        # Layer 2: Linear(hidden, hidden) + ReLU
        h = jnp.dot(w2_ref[...], h, preferred_element_type=jnp.float32)
        h = jnp.maximum(h.astype(elt) + b2, 0).astype(jnp.bfloat16)

        # Layer 3: Linear(hidden, hidden) + ReLU
        h = jnp.dot(w3_ref[...], h, preferred_element_type=jnp.float32)
        h = jnp.maximum(h.astype(elt) + b3, 0).astype(jnp.bfloat16)

        # Layer 4: Linear(hidden, 1) + Sigmoid.  W4 is zero-padded to 8 output
        # rows (row 0 is the real one) to avoid a 1-wide MXU result.
        logits = jnp.dot(w4_ref[...], h, preferred_element_type=jnp.float32)
        logits = logits[0:1, :] + b4                    # f32 (1, bt)

        # sigmoid(z) = 1 / (1 + exp(-z)); exp + approx reciprocal ride the EUP.
        o_ref[...] = pl.reciprocal(1.0 + jnp.exp(-logits),
                                   approx=True).astype(o_ref.dtype)

    return kernel


def prepare_params(params):
    """One-time: pad/pack/cast the PyTorch-layout params for the kernel.

    params: w1..w4 of shape (out_features, in_features), b1..b4 of (out,).
    """
    hidden, d_in = params["w1"].shape
    d_p = _round_up(d_in, LANES)
    h_p = _round_up(hidden, LANES)

    def pad2(a, rows, cols):
        return jnp.pad(a, ((0, rows - a.shape[0]), (0, cols - a.shape[1])))

    w1 = pad2(jnp.asarray(params["w1"]), h_p, d_p).astype(jnp.bfloat16)
    w2 = pad2(jnp.asarray(params["w2"]), h_p, h_p).astype(jnp.bfloat16)
    w3 = pad2(jnp.asarray(params["w3"]), h_p, h_p).astype(jnp.bfloat16)
    w4 = pad2(jnp.asarray(params["w4"]), SUBLANES, h_p).astype(jnp.bfloat16)

    # Pack all biases into one lane-padded f32 block: cols 0..2 = b1..b3,
    # element [0, 3] = b4 (the final scalar bias).
    bias = jnp.zeros((h_p, 4), jnp.float32)
    bias = bias.at[:hidden, 0].set(params["b1"].astype(jnp.float32))
    bias = bias.at[:hidden, 1].set(params["b2"].astype(jnp.float32))
    bias = bias.at[:hidden, 2].set(params["b3"].astype(jnp.float32))
    bias = bias.at[0, 3].set(params["b4"].astype(jnp.float32)[0])

    return {"w1": w1, "w2": w2, "w3": w3, "w4": w4, "bias": bias,
            "d_in": d_in, "hidden": hidden, "d_p": d_p, "h_p": h_p}


def mlp_forward(x, prep, *, batch_tile=None, max_batch_tile=512):
    """Run the fused MLP kernel.

    x: (B, input_dim) float32 (batch-major, as PyTorch would pass it)
    prep: output of prepare_params()
    Returns (B, 1) float32 probabilities.
    """
    B, d_in = x.shape
    assert d_in == prep["d_in"], "input feature dim mismatch"
    d_p, h_p = prep["d_p"], prep["h_p"]
    w1, w2, w3, w4, bias = prep["w1"], prep["w2"], prep["w3"], prep["w4"], prep["bias"]

    # Resident params are single-buffered (pl.Buffered(1)) -> counted once.
    param_list = [w1, w2, w3, w4, bias]
    param_bytes = sum(int(p.size) * p.dtype.itemsize for p in param_list)

    vmem_cap = _tpu_vmem_capacity_bytes()
    vmem_budget = int(0.8 * vmem_cap)           # leave headroom for Mosaic scratch

    use_bf16_eltwise = _has_bf16_valu()

    X_BUF = 3  # pipelining depth for the only streamed input

    def tile_bytes(bt):
        x_tile = X_BUF * bt * d_p * 2           # streamed bf16 x tiles
        out_tile = 2 * SUBLANES * bt * 4        # (1, bt) f32 output, double-buffered
        acts = 4 * h_p * bt * 4                 # live f32 MXU results (upper bound)
        return x_tile + out_tile + acts

    if batch_tile is None:
        if B <= LANES:
            batch_tile = LANES                  # keep the MXU N-dim lane-wide
        else:
            # >= 2 lane-aligned tiles so the "parallel" batch axis spans both
            # v7x TensorCores and the x DMA pipeline has work to overlap.
            batch_tile = min(max_batch_tile,
                             _round_up(pl.cdiv(B, 2), LANES))
            while (batch_tile > LANES
                   and param_bytes + tile_bytes(batch_tile) > vmem_budget):
                batch_tile = max(LANES, _round_up(batch_tile // 2, LANES))
    assert batch_tile % SUBLANES == 0, "batch_tile must be a multiple of 8"
    b_p = _round_up(B, batch_tile)
    num_tiles = b_p // batch_tile
    assert num_tiles == 1 or batch_tile % LANES == 0, \
        "batch_tile must be a multiple of 128 when the batch is tiled"

    # TODO(synk): stream weight panels over a hidden-dim ("arbitrary") grid
    # axis when the resident bf16 weights alone exceed the per-core VMEM
    # budget (hidden >~ 2.5-3K on v7x); such configs are rejected for now.
    assert param_bytes <= vmem_budget, (
        f"resident params ({param_bytes} B) exceed VMEM budget ({vmem_budget} B)")

    vmem_need = param_bytes + tile_bytes(batch_tile)
    vmem_limit = int(min(0.9 * vmem_cap, max(1.25 * vmem_need, 32 * 2**20)))

    # Pad the batch-major input (no transpose pass).
    x_pad = x
    if (b_p, d_p) != (B, d_in):
        x_pad = jnp.pad(x, ((0, b_p - B), (0, d_p - d_in)))
    x_pad = x_pad.astype(jnp.bfloat16)

    flops = 2 * b_p * (d_p * h_p + 2 * h_p * h_p + SUBLANES * h_p)
    cost = pl.CostEstimate(
        flops=flops,
        transcendentals=2 * b_p,
        bytes_accessed=int(x_pad.size) * 2 + param_bytes + b_p * 4)

    def resident(a):
        return _block_spec(a.shape, lambda i: (0, 0), buffers=1)

    x_buffers = min(X_BUF, num_tiles)
    kernel = make_mlp_kernel(use_bf16_eltwise)

    out = pl.pallas_call(
        kernel,
        out_shape=jax.ShapeDtypeStruct((1, b_p), jnp.float32),
        grid=(num_tiles,),
        in_specs=[
            _block_spec((batch_tile, d_p), lambda i: (i, 0), buffers=x_buffers),
            resident(w1), resident(w2), resident(w3), resident(w4),
            resident(bias),
        ],
        out_specs=pl.BlockSpec((1, batch_tile), lambda i: (0, i)),
        compiler_params=pltpu.CompilerParams(
            dimension_semantics=("parallel",),
            vmem_limit_bytes=vmem_limit),
        cost_estimate=cost,
    )(x_pad, w1, w2, w3, w4, bias)

    return out[0, :B].reshape(B, 1)


def init_params(key, input_dim, hidden_dim):
    """Deterministic synthetic parameters in PyTorch nn.Linear layout."""
    keys = jax.random.split(key, 8)

    def linear(kw, kb, fan_in, fan_out):
        bound = 1.0 / jnp.sqrt(fan_in)
        w = jax.random.uniform(kw, (fan_out, fan_in), jnp.float32, -bound, bound)
        b = jax.random.uniform(kb, (fan_out,), jnp.float32, -bound, bound)
        return w, b

    w1, b1 = linear(keys[0], keys[1], input_dim, hidden_dim)
    w2, b2 = linear(keys[2], keys[3], hidden_dim, hidden_dim)
    w3, b3 = linear(keys[4], keys[5], hidden_dim, hidden_dim)
    w4, b4 = linear(keys[6], keys[7], hidden_dim, 1)
    return {"w1": w1, "b1": b1, "w2": w2, "b2": b2,
            "w3": w3, "b3": b3, "w4": w4, "b4": b4}


def mlp_reference(x, p):
    h = jnp.maximum(x @ p["w1"].T + p["b1"], 0.0)
    h = jnp.maximum(h @ p["w2"].T + p["b2"], 0.0)
    h = jnp.maximum(h @ p["w3"].T + p["b3"], 0.0)
    return jax.nn.sigmoid(h @ p["w4"].T + p["b4"])


if __name__ == "__main__":
    input_dim = 32
    hidden_dim = 32
    batch = 8

    key = jax.random.PRNGKey(0)
    kx, kp = jax.random.split(key)
    x = jax.random.normal(kx, (batch, input_dim), jnp.float32)
    params = init_params(kp, input_dim, hidden_dim)

    prep = prepare_params(params)          # one-time weight pad/pack/cast
    out = jax.block_until_ready(mlp_forward(x, prep))
    ref = mlp_reference(x, params)

    assert out.shape == (batch, 1)
    max_err = jnp.max(jnp.abs(out - ref))
    # bf16 dot inputs / bf16 epilogue (f32 accumulation) -> relaxed tolerance.
    assert jnp.allclose(out, ref, atol=2e-2, rtol=2e-2), \
        f"mismatch vs reference, max abs diff = {max_err}"

    print("KERNEL_OK")
</pallas_src>

<mosaic_0001>
module attributes {stable_mosaic.version = 11 : i64} {
  func.func @kernel(%arg0: i32, %arg1: memref<128x128xbf16, #tpu.memory_space<vmem>>, %arg2: memref<128x128xbf16, #tpu.memory_space<vmem>>, %arg3: memref<128x128xbf16, #tpu.memory_space<vmem>>, %arg4: memref<128x128xbf16, #tpu.memory_space<vmem>>, %arg5: memref<8x128xbf16, #tpu.memory_space<vmem>>, %arg6: memref<128x4xf32, #tpu.memory_space<vmem>>, %arg7: memref<1x128xf32, #tpu.memory_space<vmem>>) attributes {dimension_semantics = [#tpu.dimension_semantics<parallel>], iteration_bounds = array<i64: 1>, scalar_prefetch = 0 : i64, scratch_operands = 0 : i64, tpu.core_type = #tpu.core_type<tc>, window_params = [{pipeline_mode = #tpu.pipeline_mode<synchronous>, transform_indices = @transform_0, window_bounds = array<i64: 128, 128>}, {pipeline_mode = #tpu.pipeline_mode<synchronous>, transform_indices = @transform_1, window_bounds = array<i64: 128, 128>}, {pipeline_mode = #tpu.pipeline_mode<synchronous>, transform_indices = @transform_2, window_bounds = array<i64: 128, 128>}, {pipeline_mode = #tpu.pipeline_mode<synchronous>, transform_indices = @transform_3, window_bounds = array<i64: 128, 128>}, {pipeline_mode = #tpu.pipeline_mode<synchronous>, transform_indices = @transform_4, window_bounds = array<i64: 8, 128>}, {pipeline_mode = #tpu.pipeline_mode<synchronous>, transform_indices = @transform_5, window_bounds = array<i64: 128, 4>}, {transform_indices = @transform_6, window_bounds = array<i64: 1, 128>}]} {
    %c0 = arith.constant 0 : index
    %c0_0 = arith.constant 0 : index
    %0 = vector.load %arg1[%c0, %c0_0] : memref<128x128xbf16, #tpu.memory_space<vmem>>, vector<128x128xbf16>
    %c0_1 = arith.constant 0 : index
    %c0_2 = arith.constant 0 : index
    %1 = vector.load %arg6[%c0_1, %c0_2] : memref<128x4xf32, #tpu.memory_space<vmem>>, vector<128x1xf32>
    %2 = arith.truncf %1 : vector<128x1xf32> to vector<128x1xbf16>
    %c0_3 = arith.constant 0 : index
    %c1 = arith.constant 1 : index
    %3 = vector.load %arg6[%c0_3, %c1] : memref<128x4xf32, #tpu.memory_space<vmem>>, vector<128x1xf32>
    %4 = arith.truncf %3 : vector<128x1xf32> to vector<128x1xbf16>
    %c0_4 = arith.constant 0 : index
    %c2 = arith.constant 2 : index
    %5 = vector.load %arg6[%c0_4, %c2] : memref<128x4xf32, #tpu.memory_space<vmem>>, vector<128x1xf32>
    %6 = arith.truncf %5 : vector<128x1xf32> to vector<128x1xbf16>
    %c0_5 = arith.constant 0 : index
    %c3 = arith.constant 3 : index
    %7 = vector.load %arg6[%c0_5, %c3] : memref<128x4xf32, #tpu.memory_space<vmem>>, vector<1x1xf32>
    %c0_6 = arith.constant 0 : index
    %c0_7 = arith.constant 0 : index
    %8 = vector.load %arg2[%c0_6, %c0_7] : memref<128x128xbf16, #tpu.memory_space<vmem>>, vector<128x128xbf16>
    %cst = arith.constant dense<0.000000e+00> : vector<128x128xf32>
    %9 = tpu.matmul %8, %0, %cst {dimension_numbers = #tpu.dot_dimension_numbers<[1], [1], [0], [0], [0, 0, 1, 0], [], []>} : vector<128x128xbf16>, vector<128x128xbf16>, vector<128x128xf32> -> vector<128x128xf32>
    %10 = arith.truncf %9 : vector<128x128xf32> to vector<128x128xbf16>
    %11 = vector.broadcast %2 : vector<128x1xbf16> to vector<128x128xbf16>
    %12 = arith.addf %10, %11 : vector<128x128xbf16>
    %cst_8 = arith.constant 0.000000e+00 : bf16
    %13 = vector.broadcast %cst_8 : bf16 to vector<128x128xbf16>
    %14 = arith.maximumf %12, %13 : vector<128x128xbf16>
    %c0_9 = arith.constant 0 : index
    %c0_10 = arith.constant 0 : index
    %15 = vector.load %arg3[%c0_9, %c0_10] : memref<128x128xbf16, #tpu.memory_space<vmem>>, vector<128x128xbf16>
    %cst_11 = arith.constant dense<0.000000e+00> : vector<128x128xf32>
    %16 = tpu.matmul %15, %14, %cst_11 {dimension_numbers = #tpu.dot_dimension_numbers<[1], [0], [0], [1], [0, 0, 1, 1], [], []>} : vector<128x128xbf16>, vector<128x128xbf16>, vector<128x128xf32> -> vector<128x128xf32>
    %17 = arith.truncf %16 : vector<128x128xf32> to vector<128x128xbf16>
    %18 = vector.broadcast %4 : vector<128x1xbf16> to vector<128x128xbf16>
    %19 = arith.addf %17, %18 : vector<128x128xbf16>
    %cst_12 = arith.constant 0.000000e+00 : bf16
    %20 = vector.broadcast %cst_12 : bf16 to vector<128x128xbf16>
    %21 = arith.maximumf %19, %20 : vector<128x128xbf16>
    %c0_13 = arith.constant 0 : index
    %c0_14 = arith.constant 0 : index
    %22 = vector.load %arg4[%c0_13, %c0_14] : memref<128x128xbf16, #tpu.memory_space<vmem>>, vector<128x128xbf16>
    %cst_15 = arith.constant dense<0.000000e+00> : vector<128x128xf32>
    %23 = tpu.matmul %22, %21, %cst_15 {dimension_numbers = #tpu.dot_dimension_numbers<[1], [0], [0], [1], [0, 0, 1, 1], [], []>} : vector<128x128xbf16>, vector<128x128xbf16>, vector<128x128xf32> -> vector<128x128xf32>
    %24 = arith.truncf %23 : vector<128x128xf32> to vector<128x128xbf16>
    %25 = vector.broadcast %6 : vector<128x1xbf16> to vector<128x128xbf16>
    %26 = arith.addf %24, %25 : vector<128x128xbf16>
    %cst_16 = arith.constant 0.000000e+00 : bf16
    %27 = vector.broadcast %cst_16 : bf16 to vector<128x128xbf16>
    %28 = arith.maximumf %26, %27 : vector<128x128xbf16>
    %c0_17 = arith.constant 0 : index
    %c0_18 = arith.constant 0 : index
    %29 = vector.load %arg5[%c0_17, %c0_18] : memref<8x128xbf16, #tpu.memory_space<vmem>>, vector<8x128xbf16>
    %cst_19 = arith.constant dense<0.000000e+00> : vector<8x128xf32>
    %30 = tpu.matmul %29, %28, %cst_19 {dimension_numbers = #tpu.dot_dimension_numbers<[1], [0], [0], [1], [0, 0, 1, 1], [], []>} : vector<8x128xbf16>, vector<128x128xbf16>, vector<8x128xf32> -> vector<8x128xf32>
    %31 = vector.extract_strided_slice %30 {offsets = [0, 0], sizes = [1, 128], strides = [1, 1]} : vector<8x128xf32> to vector<1x128xf32>
    %32 = vector.broadcast %7 : vector<1x1xf32> to vector<1x128xf32>
    %33 = arith.addf %31, %32 : vector<1x128xf32>
    %cst_20 = arith.constant 0.000000e+00 : f32
    %34 = vector.broadcast %cst_20 : f32 to vector<1x128xf32>
    %35 = arith.subf %34, %33 : vector<1x128xf32>
    %36 = math.exp %35 : vector<1x128xf32>
    %cst_21 = arith.constant 1.000000e+00 : f32
    %37 = vector.broadcast %cst_21 : f32 to vector<1x128xf32>
    %38 = arith.addf %37, %36 : vector<1x128xf32>
    %39 = tpu.reciprocal %38 {approx = true} : vector<1x128xf32> -> vector<1x128xf32>
    %c0_22 = arith.constant 0 : index
    %c0_23 = arith.constant 0 : index
    %40 = vector.load %arg7[%c0_22, %c0_23] : memref<1x128xf32, #tpu.memory_space<vmem>>, vector<1x128xf32>
    tpu.vector_store %arg7[%c0_22, %c0_23], %39 {strides = array<i32>} : memref<1x128xf32, #tpu.memory_space<vmem>>, vector<1x128xf32>,
    return
  }
  func.func @transform_0(%arg0: i32) -> (i32, i32) {
    %c0_i32 = arith.constant 0 : i32
    %c0_i32_0 = arith.constant 0 : i32
    return %arg0, %c0_i32 : i32, i32
  }
  func.func @transform_1(%arg0: i32) -> (i32, i32) {
    %c0_i32 = arith.constant 0 : i32
    %c0_i32_0 = arith.constant 0 : i32
    %c0_i32_1 = arith.constant 0 : i32
    return %c0_i32, %c0_i32_0 : i32, i32
  }
  func.func @transform_2(%arg0: i32) -> (i32, i32) {
    %c0_i32 = arith.constant 0 : i32
    %c0_i32_0 = arith.constant 0 : i32
    %c0_i32_1 = arith.constant 0 : i32
    return %c0_i32, %c0_i32_0 : i32, i32
  }
  func.func @transform_3(%arg0: i32) -> (i32, i32) {
    %c0_i32 = arith.constant 0 : i32
    %c0_i32_0 = arith.constant 0 : i32
    %c0_i32_1 = arith.constant 0 : i32
    return %c0_i32, %c0_i32_0 : i32, i32
  }
  func.func @transform_4(%arg0: i32) -> (i32, i32) {
    %c0_i32 = arith.constant 0 : i32
    %c0_i32_0 = arith.constant 0 : i32
    %c0_i32_1 = arith.constant 0 : i32
    return %c0_i32, %c0_i32_0 : i32, i32
  }
  func.func @transform_5(%arg0: i32) -> (i32, i32) {
    %c0_i32 = arith.constant 0 : i32
    %c0_i32_0 = arith.constant 0 : i32
    %c0_i32_1 = arith.constant 0 : i32
    return %c0_i32, %c0_i32_0 : i32, i32
  }
  func.func @transform_6(%arg0: i32) -> (i32, i32) {
    %c0_i32 = arith.constant 0 : i32
    %c0_i32_0 = arith.constant 0 : i32
    return %c0_i32, %arg0 : i32, i32
  }
}

</mosaic_0001>

<bundles_post_ra>
// kernel: tpu_custom_call.1
= control target key start
LH: loop header
LB: loop body
LE: loop exit
PB: predicated region body
PF: predicated region fallthrough
CT: control target
= control target key end

     0   :  { %11 = vsyncpa [#allocation3], 0  ;;  %s1460_s0 = inlined_call_operand.vmem [shape: bf16[128,128], index: 0, kind: input, shape index: {}]   ;;  %s1461_s1 = inlined_call_operand.vmem [shape: bf16[128,128], index: 1, kind: input, shape index: {}]   ;;  %s1462_s2 = inlined_call_operand.hbm [shape: bf16[128,128], index: 2, kind: input, shape index: {}]   ;;  %s1463_s3 = inlined_call_operand.hbm [shape: bf16[128,128], index: 3, kind: input, shape index: {}]   ;;  %s1464_s4 = inlined_call_operand.vmem [shape: bf16[8,128], index: 4, kind: input, shape index: {}]   ;;  %s1465_s5 = inlined_call_operand.vmem [shape: f32[128,4], index: 5, kind: input, shape index: {}]   ;;  %s1466_s6 = inlined_call_operand.hbm [shape: f32[1,128], index: 6, kind: output, shape index: {}]  }
   0x1   :  { %12 = vsyncpa [#allocation6], 0 }
   0x2   :  { %13 = vsyncpa [#allocation4], 0  ;;  %s1201_s21 = smov [#allocation2]   ;;  %s1129_s25 = scalar_lea.hbm %s1462_s2, 1024 }
   0x3   :  { %s23_s22 = sshll.u32 %s1201_s21, 4  ;;  %p1130_p0 = scmp.ne.s32.totalorder %s1462_s2, %s1129_s25  ;;  %s24_s22 = int_to_ptr.vmem [resolvable:$true] %s23_s22 }
   0x4   :  { %p1133_p1 = scmp.lt.u32.totalorder %s1129_s25, %s1462_s2 }
   0x6   :  { %p1135_p2 = pnand %p1133_p1, %p1130_p0 }
   0x8   :  { %1138 = shalt.err (!%p1135_p2)
}
   0x9   :  { %s1139_s30 = scalar_lea.vmem %s24_s22, 1024  ;;  %p1144_p4 = scmp.lt.s32.totalorder %s24_s22, %s24_s22 }
   0xa   :  { %p1140_p3 = scmp.ne.s32.totalorder %s24_s22, %s1139_s30  ;;  %p1145_p5 = scmp.lt.s32.totalorder %s1139_s30, %s1139_s30 }
   0xc   :  { %p1146_p6 = por %p1145_p5, %p1144_p4 }
   0xe   :  { %p1147_p7 = pnand %p1146_p6, %p1140_p3 }
  0x10   :  { %1150 = shalt.err (!%p1147_p7)
}
  0x11   :  { %s1202_s7 = smov 64   ;;  %s1203_s8 = smov 4  }
  0x12   :  { %29 = dma.hbm_to_vmem [thread:$0]  %s1462_s2, 1024, %s24_s22, [#allocation3], %s1202_s7, %s1202_s7, %s1203_s8  }
  0x13   :  { %s1204_s11 = smov [#allocation5]   ;;  %s1151_s15 = scalar_lea.hbm %s1463_s3, 1024 }
  0x14   :  { %s35_s12 = sshll.u32 %s1204_s11, 4  ;;  %p1152_p8 = scmp.ne.s32.totalorder %s1463_s3, %s1151_s15  ;;  %s36_s12 = int_to_ptr.vmem [resolvable:$true] %s35_s12 }
  0x15   :  { %p1155_p9 = scmp.lt.u32.totalorder %s1151_s15, %s1463_s3 }
  0x17   :  { %p1157_p10 = pnand %p1155_p9, %p1152_p8 }
  0x19   :  { %1160 = shalt.err (!%p1157_p10)
}
  0x1a   :  { %s1161_s20 = scalar_lea.vmem %s36_s12, 1024  ;;  %p1166_p12 = scmp.lt.s32.totalorder %s36_s12, %s36_s12 }
  0x1b   :  { %p1162_p11 = scmp.ne.s32.totalorder %s36_s12, %s1161_s20  ;;  %p1167_p13 = scmp.lt.s32.totalorder %s1161_s20, %s1161_s20 }
  0x1d   :  { %p1168_p0 = por %p1167_p13, %p1166_p12 }
  0x1f   :  { %p1169_p1 = pnand %p1168_p0, %p1162_p11 }
  0x21   :  { %1172 = shalt.err (!%p1169_p1)
}
  0x22   :  { %41 = dma.hbm_to_vmem [thread:$0]  %s1463_s3, 1024, %s36_s12, [#allocation6], %s1202_s7, %s1202_s7, %s1203_s8  }
  0x23   :  { %1195 = dma.done.wait [#allocation3], 1024  }
  0x24   :  { %1196 = vsyncadd [#allocation3], 4294966272 }
  0x25   :  { %1197 = dma.done.wait [#allocation6], 1024  }
  0x26   :  { %1198 = vsyncadd [#allocation6], 4294966272  ;;  %v1205_v0 = vmov 0   ;;  %v1093_v1 = vld [vmem:[%s1460_s0] sm:$0xff]   ;;  %v1094_v2 = vld [vmem:[%s1460_s0 + $0x8] sm:$0xff]   ;;  %v1206_v42 = vmov 1  }
  0x27   :  { %1086 = vset.pattern.permute.xlu0 %v1205_v0  ;;  %1087 = vset.pattern.permute.xlu1 %v1205_v0  ;;  %v1095_v3 = vld [vmem:[%s1460_s0 + $0x10] sm:$0xff]   ;;  %v1101_v4 = vld [vmem:[%s1461_s1] sm:$0xff]   ;;  %v1096_v5 = vld [vmem:[%s1460_s0 + $0x18] sm:$0xff]   ;;  %vm1209_vm0 = vmmov 0   ;;  %s1211_s10 = smov [#allocation7]  }
  0x28   :  { %959 = vmatprep.subr.bf16.mxu0 %v1093_v1  ;;  %975 = vmatprep.mubr.bf16.mxu0 %v1101_v4  ;;  %v69_v6 = vld [vmem:[%s1465_s5] sm:$0xff]  ;;  %v70_v7 = vld [vmem:[%s1465_s5 + $0x8] sm:$0xff]  ;;  %v71_v8 = vld [vmem:[%s1465_s5 + $0x10] sm:$0xff]  ;;  %s860_s11 = sshll.u32 %s1211_s10, 4  ;;  %s861_s11 = int_to_ptr.vmem [resolvable:$true] %s860_s11 }
  0x29   :  { %960 = vmatpush3.bf16.xpose.msra.mxu0 %v1093_v1  ;;  %v1297_v9 = vpack.c.bf16 %v70_v7, %v69_v6  ;;  %v72_v10 = vld [vmem:[%s1465_s5 + $0x18] sm:$0xff]  ;;  %v73_v11 = vld [vmem:[%s1465_s5 + $0x20] sm:$0xff]  ;;  %v74_v12 = vld [vmem:[%s1465_s5 + $0x28] sm:$0xff]  ;;  %s1173_s12 = scalar_lea.vmem %s861_s11, 16  ;;  %p1178_p3 = scmp.lt.s32.totalorder %s861_s11, %s861_s11 }
  0x2a   :  { %961 = vmatprep.subr.bf16.mxu0 %v1094_v2  ;;  %v1308_v13 = vpack.c.bf16 %v74_v12, %v73_v11  ;;  %v75_v14 = vld [vmem:[%s1465_s5 + $0x30] sm:$0xff]  ;;  %v1314_v15 = vpack.c.bf16 %v72_v10, %v71_v8  ;;  %v76_v16 = vld [vmem:[%s1465_s5 + $0x38] sm:$0xff]  ;;  %v77_v17 = vld [vmem:[%s1465_s5 + $0x40] sm:$0xff]  ;;  %p1174_p2 = scmp.ne.s32.totalorder %s861_s11, %s1173_s12 }
  0x2b   :  { %313 = vperm.xlu0 %1086, %v1297_v9   ;;  %v78_v18 = vld [vmem:[%s1465_s5 + $0x48] sm:$0xff]  ;;  %v1326_v19 = vpack.c.bf16 %v76_v16, %v75_v14  ;;  %v79_v20 = vld [vmem:[%s1465_s5 + $0x50] sm:$0xff]  ;;  %v80_v21 = vld [vmem:[%s1465_s5 + $0x58] sm:$0xff] }
  0x2c   :  { %323 = vperm.xlu1 %1087, %v1308_v13   ;;  %v1097_v22 = vld [vmem:[%s1460_s0 + $0x20] sm:$0xff]   ;;  %v82_v24 = vld [vmem:[%s1465_s5 + $0x68] sm:$0xff]  ;;  %v1344_v25 = vpack.c.bf16 %v78_v18, %v77_v17  ;;  %v83_v26 = vld [vmem:[%s1465_s5 + $0x70] sm:$0xff]  ;;  %v1353_v28 = vpack.c.bf16 %v80_v21, %v79_v20 }
  0x2d   :  { %v81_v23 = vld [vmem:[%s1465_s5 + $0x60] sm:$0xff]  ;;  %v84_v27 = vld [vmem:[%s1465_s5 + $0x78] sm:$0xff]  ;;  %v1098_v31 = vld [vmem:[%s1460_s0 + $0x28] sm:$0xff]  }
  0x2e   :  { %v1356_v29 = vpack.c.bf16 %v82_v24, %v81_v23  ;;  %v1359_v30 = vpack.c.bf16 %v84_v27, %v83_v26  ;;  %v1099_v32 = vld [vmem:[%s1460_s0 + $0x30] sm:$0xff]   ;;  %v1100_v33 = vld [vmem:[%s1460_s0 + $0x38] sm:$0xff]   ;;  %v1102_v34 = vld [vmem:[%s1461_s1 + $0x8] sm:$0xff]  }
  0x2f   :  { %318 = vperm.xlu0 %1086, %v1314_v15   ;;  %v1103_v35 = vld [vmem:[%s1461_s1 + $0x10] sm:$0xff]   ;;  %v1104_v36 = vld [vmem:[%s1461_s1 + $0x18] sm:$0xff]   ;;  %v1105_v37 = vld [vmem:[%s1461_s1 + $0x20] sm:$0xff]  }
  0x30   :  { %328 = vperm.xlu1 %1087, %v1326_v19   ;;  %v1106_v38 = vld [vmem:[%s1461_s1 + $0x28] sm:$0xff]   ;;  %v1107_v39 = vld [vmem:[%s1461_s1 + $0x30] sm:$0xff]   ;;  %v1108_v40 = vld [vmem:[%s1461_s1 + $0x38] sm:$0xff]  }
  0x31   :  { %962 = vmatpush3.bf16.xpose.msra.mxu0 %v1094_v2  ;;  %v1109_v41 = vld [vmem:[#allocation2] sm:$0xff]  }
  0x32   :  { %963 = vmatprep.subr.bf16.mxu0 %v1095_v3  ;;  %1007 = vmatprep.mubr.bf16.mxu1 %v1109_v41  ;;  %v1115_v41 = vld [vmem:[#allocation2 + $0x30] sm:$0xff]  }
  0x33   :  { %333 = vperm.xlu0 %1086, %v1344_v25  }
  0x34   :  { %338 = vperm.xlu1 %1087, %v1353_v28  }
  0x37   :  { %343 = vperm.xlu0 %1086, %v1356_v29  }
  0x38   :  { %348 = vperm.xlu1 %1087, %v1359_v30  }
  0x39   :  { %964 = vmatpush3.bf16.xpose.msra.mxu0 %v1095_v3 }
  0x3a   :  { %965 = vmatprep.subr.bf16.mxu0 %v1096_v5 }
  0x3b   :  { %1088 = vset.pattern.permute.xlu0 %v1206_v42 }
  0x3c   :  { %1089 = vset.pattern.permute.xlu1 %v1206_v42  ;;  %537 = vperm.xlu0 %1088, %v1297_v9   ;;  %v1116_v42 = vld [vmem:[#allocation2 + $0x38] sm:$0xff]  }
  0x3d   :  { %541 = vperm.xlu1 %1089, %v1314_v15  }
  0x40   :  { %549 = vperm.xlu0 %1088, %v1326_v19  }
  0x41   :  { %966 = vmatpush3.bf16.xpose.msra.mxu0 %v1096_v5  ;;  %545 = vperm.xlu1 %1089, %v1308_v13  }
  0x42   :  { %967 = vmatprep.subr.bf16.mxu0 %v1097_v22 }
  0x44   :  { %557 = vperm.xlu0 %1088, %v1353_v28  }
  0x45   :  { %553 = vperm.xlu1 %1089, %v1344_v25  }
  0x48   :  { %565 = vperm.xlu0 %1088, %v1359_v30  }
  0x49   :  { %968 = vmatpush3.bf16.xpose.msra.mxu0 %v1097_v22  ;;  %561 = vperm.xlu1 %1089, %v1356_v29  }
  0x4a   :  { %969 = vmatprep.subr.bf16.mxu0 %v1098_v31 }
  0x51   :  { %970 = vmatpush3.bf16.xpose.msra.mxu0 %v1098_v31 }
  0x52   :  { %971 = vmatprep.subr.bf16.mxu0 %v1099_v32 }
  0x59   :  { %972 = vmatpush3.bf16.xpose.msra.mxu0 %v1099_v32 }
  0x5a   :  { %973 = vmatprep.subr.bf16.mxu0 %v1100_v33 }
  0x61   :  { %974 = vmatpush3.bf16.xpose.msra.mxu0 %v1100_v33 }
  0x68   :  { %976 = vmatmul.mubr.bf16.vlgmr.msra.gmra.mrb[0].mxu0 %v1102_v34 }
  0x69   :  { %979 = vmatprep.mubr.bf16.mxu0 %v1103_v35 }
  0x70   :  { %980 = vmatmul.mubr.bf16.gmra.mrb[4].mxu0 %v1104_v36  ;;  %v1110_v36 = vld [vmem:[#allocation2 + $0x8] sm:$0xff]  }
  0x71   :  { %983 = vmatprep.mubr.bf16.mxu0 %v1105_v37  ;;  %v1111_v37 = vld [vmem:[#allocation2 + $0x10] sm:$0xff]  }
  0x78   :  { %984 = vmatmul.mubr.bf16.gmra.mrb[8].mxu0 %v1106_v38  ;;  %v1112_v38 = vld [vmem:[#allocation2 + $0x18] sm:$0xff]  }
  0x79   :  { %987 = vmatprep.mubr.bf16.mxu0 %v1107_v39  ;;  %v1113_v39 = vld [vmem:[#allocation2 + $0x20] sm:$0xff]  }
  0x80   :  { %988 = vmatmul.mubr.bf16.gmra.mrb[12].mxu0 %v1108_v40  ;;  %v1114_v40 = vld [vmem:[#allocation2 + $0x28] sm:$0xff]  }
  0xaa   :  { %v314_v43 = vpop.permute.xlu0 %313 }
  0xab   :  { %v324_v53 = vpop.permute.xlu1 %323 }
  0xae   :  { %v319_v50 = vpop.permute.xlu0 %318 }
  0xaf   :  { %v329_v62 = vpop.permute.xlu1 %328 }
  0xb2   :  { %v334_v11 = vpop.permute.xlu0 %333 }
  0xb3   :  { %v339_v12 = vpop.permute.xlu1 %338 }
  0xb6   :  { %v344_v27 = vpop.permute.xlu0 %343 }
  0xb7   :  { %v349_v31 = vpop.permute.xlu1 %348 }
 0x13b   :  { %v977_v44 = vpop.f32.mrb[0].mxu0 }
 0x13c   :  { %v240_v45 = vpop.f32.mrb[1].mxu0 }
 0x13d   :  { %v978_v46 = vpop.f32.mrb[2].mxu0 }
 0x13e   :  { %v304_v47 = vpack.c.bf16 %v978_v46, %v977_v44  ;;  %v243_v48 = vpop.f32.mrb[3].mxu0  ;;  %v1207_v44 = vmov 2  }
 0x13f   :  { %v303_v49 = vpack.c.bf16 %v243_v48, %v240_v45  ;;  %1090 = vset.pattern.permute.xlu1 %v1207_v44  ;;  %1091 = vset.pattern.permute.xlu0 %v1207_v44 }
 0x140   :  { %v352_v51 = vadd.bf16 %v319_v50, %v304_v47  ;;  %754 = vperm.xlu1 %1090, %v1297_v9   ;;  %758 = vperm.xlu0 %1091, %v1314_v15   ;;  %v538_v50 = vpop.permute.xlu0 %537  ;;  %v542_v15 = vpop.permute.xlu1 %541 }
 0x141   :  { %v351_v52 = vadd.bf16 %v314_v43, %v303_v49  ;;  %v1117_v43 = vld [vmem:[#allocation5] sm:$0xff]  }
 0x142   :  { %v360_v58 = vmax.bf16 %v1205_v0, %v352_v51 }
 0x143   :  { %v981_v54 = vpop.f32.mrb[4].mxu0  ;;  %v359_v55 = vmax.bf16 %v1205_v0, %v351_v52 }
 0x144   :  { %v256_v56 = vpop.f32.mrb[5].mxu0  ;;  %762 = vperm.xlu1 %1090, %v1308_v13   ;;  %770 = vperm.xlu0 %1091, %v1344_v25  }
 0x145   :  { %v982_v57 = vpop.f32.mrb[6].mxu0  ;;  %991 = vmatprep.subr.bf16.mxu1 %v359_v55 }
 0x146   :  { %v306_v59 = vpack.c.bf16 %v982_v57, %v981_v54  ;;  %v259_v60 = vpop.f32.mrb[7].mxu0  ;;  %992 = vmatpush3.bf16.msra.mxu1 %v359_v55  ;;  %v550_v55 = vpop.permute.xlu0 %549 }
 0x147   :  { %v305_v61 = vpack.c.bf16 %v259_v60, %v256_v56  ;;  %993 = vmatprep.subr.bf16.mxu1 %v360_v58  ;;  %v546_v56 = vpop.permute.xlu1 %545 }
 0x148   :  { %v354_v63 = vadd.bf16 %v329_v62, %v306_v59  ;;  %766 = vperm.xlu1 %1090, %v1326_v19   ;;  %778 = vperm.xlu0 %1091, %v1356_v29  }
 0x149   :  { %v353_v1 = vadd.bf16 %v324_v53, %v305_v61 }
 0x14a   :  { %994 = vmatpush3.bf16.msra.mxu1 %v360_v58  ;;  %v362_v6 = vmax.bf16 %v1205_v0, %v354_v63 }
 0x14b   :  { %v985_v2 = vpop.f32.mrb[8].mxu0  ;;  %v361_v3 = vmax.bf16 %v1205_v0, %v353_v1 }
 0x14c   :  { %v272_v4 = vpop.f32.mrb[9].mxu0  ;;  %774 = vperm.xlu1 %1090, %v1353_v28  }
 0x14d   :  { %v986_v5 = vpop.f32.mrb[10].mxu0  ;;  %995 = vmatprep.subr.bf16.mxu1 %v361_v3 }
 0x14e   :  { %v308_v7 = vpack.c.bf16 %v986_v5, %v985_v2  ;;  %v275_v8 = vpop.f32.mrb[11].mxu0  ;;  %996 = vmatpush3.bf16.msra.mxu1 %v361_v3  ;;  %v554_v5 = vpop.permute.xlu1 %553 }
 0x14f   :  { %v307_v10 = vpack.c.bf16 %v275_v8, %v272_v4  ;;  %997 = vmatprep.subr.bf16.mxu1 %v362_v6  ;;  %v558_v4 = vpop.permute.xlu0 %557 }
 0x150   :  { %v356_v14 = vadd.bf16 %v339_v12, %v308_v7  ;;  %782 = vperm.xlu1 %1090, %v1359_v30  }
 0x151   :  { %v355_v16 = vadd.bf16 %v334_v11, %v307_v10 }
 0x152   :  { %998 = vmatpush3.bf16.msra.mxu1 %v362_v6  ;;  %v364_v22 = vmax.bf16 %v1205_v0, %v356_v14 }
 0x153   :  { %v989_v17 = vpop.f32.mrb[12].mxu0  ;;  %v363_v18 = vmax.bf16 %v1205_v0, %v355_v16 }
 0x154   :  { %v288_v20 = vpop.f32.mrb[13].mxu0 }
 0x155   :  { %v990_v21 = vpop.f32.mrb[14].mxu0  ;;  %999 = vmatprep.subr.bf16.mxu1 %v363_v18 }
 0x156   :  { %v310_v23 = vpack.c.bf16 %v990_v21, %v989_v17  ;;  %v291_v24 = vpop.f32.mrb[15].mxu0  ;;  %1000 = vmatpush3.bf16.msra.mxu1 %v363_v18  ;;  %v562_v21 = vpop.permute.xlu1 %561 }
 0x157   :  { %v309_v26 = vpack.c.bf16 %v291_v24, %v288_v20  ;;  %1001 = vmatprep.subr.bf16.mxu1 %v364_v22  ;;  %v566_v20 = vpop.permute.xlu0 %565 }
 0x158   :  { %v358_v32 = vadd.bf16 %v349_v31, %v310_v23  ;;  %v1119_v31 = vld [vmem:[#allocation5 + $0x10] sm:$0xff]  }
 0x159   :  { %v357_v33 = vadd.bf16 %v344_v27, %v309_v26  ;;  %v1118_v27 = vld [vmem:[#allocation5 + $0x8] sm:$0xff]  }
 0x15a   :  { %1002 = vmatpush3.bf16.msra.mxu1 %v364_v22  ;;  %v366_v35 = vmax.bf16 %v1205_v0, %v358_v32  ;;  %v1120_v32 = vld [vmem:[#allocation5 + $0x18] sm:$0xff]  }
 0x15b   :  { %v365_v34 = vmax.bf16 %v1205_v0, %v357_v33  ;;  %v1121_v33 = vld [vmem:[#allocation5 + $0x20] sm:$0xff]  }
 0x15d   :  { %1003 = vmatprep.subr.bf16.mxu1 %v365_v34 }
 0x15e   :  { %1004 = vmatpush3.bf16.msra.mxu1 %v365_v34  ;;  %v1122_v34 = vld [vmem:[#allocation5 + $0x28] sm:$0xff]  }
 0x15f   :  { %1005 = vmatprep.subr.bf16.mxu1 %v366_v35 }
 0x162   :  { %1006 = vmatpush3.bf16.msra.mxu1 %v366_v35  ;;  %v1123_v35 = vld [vmem:[#allocation5 + $0x30] sm:$0xff]  }
 0x165   :  { %1008 = vmatmul.mubr.bf16.vlgmr.msra.gmra.mrb[0].mxu1 %v1110_v36  ;;  %v1124_v36 = vld [vmem:[#allocation5 + $0x38] sm:$0xff]  }
 0x166   :  { %1011 = vmatprep.mubr.bf16.mxu1 %v1111_v37  ;;  %v1208_v37 = vmov 0.0  }
 0x167   :  { %1055 = vmatprep.subr.bf16.mxu0 %v1208_v37  ;;  %1071 = vmatprep.mubr.msk.bf16.mxu0 %vm1209_vm0, %v1208_v37 }
 0x16d   :  { %1012 = vmatmul.mubr.bf16.gmra.mrb[4].mxu1 %v1112_v38  ;;  %v93_v38 = vld [vmem:[%s1465_s5] sm:$0x1] }
 0x16e   :  { %1015 = vmatprep.mubr.bf16.mxu1 %v1113_v39  ;;  %v1210_v39 = vmov 3  }
 0x16f   :  { %1092 = vset.pattern.permute.xlu0 %v1210_v39 }
 0x170   :  { %844 = vperm.xlu0 %1092, %v93_v38  }
 0x175   :  { %1016 = vmatmul.mubr.bf16.gmra.mrb[8].mxu1 %v1114_v40 }
 0x176   :  { %1019 = vmatprep.mubr.bf16.mxu1 %v1115_v41 }
 0x17d   :  { %1020 = vmatmul.mubr.bf16.gmra.mrb[12].mxu1 %v1116_v42 }
 0x17e   :  { %1039 = vmatprep.mubr.bf16.mxu1 %v1117_v43 }
 0x1bf   :  { %v755_v43 = vpop.permute.xlu1 %754 }
 0x238   :  { %v1009_v45 = vpop.f32.mrb[0].mxu1 }
 0x239   :  { %v465_v46 = vpop.f32.mrb[1].mxu1 }
 0x23a   :  { %v1010_v47 = vpop.f32.mrb[2].mxu1 }
 0x23b   :  { %v529_v48 = vpack.c.bf16 %v1010_v47, %v1009_v45  ;;  %v468_v49 = vpop.f32.mrb[3].mxu1 }
 0x23c   :  { %v528_v9 = vpack.c.bf16 %v468_v49, %v465_v46 }
 0x23d   :  { %v569_v51 = vadd.bf16 %v542_v15, %v529_v48  ;;  %v759_v48 = vpop.permute.xlu0 %758  ;;  %v763_v15 = vpop.permute.xlu1 %762 }
 0x23e   :  { %v568_v13 = vadd.bf16 %v538_v50, %v528_v9 }
 0x23f   :  { %v577_v28 = vmax.bf16 %v1205_v0, %v569_v51 }
 0x240   :  { %v1013_v52 = vpop.f32.mrb[4].mxu1  ;;  %v576_v25 = vmax.bf16 %v1205_v0, %v568_v13 }
 0x241   :  { %v481_v19 = vpop.f32.mrb[5].mxu1 }
 0x242   :  { %v1014_v53 = vpop.f32.mrb[6].mxu1  ;;  %1023 = vmatprep.subr.bf16.mxu1 %v576_v25 }
 0x243   :  { %v531_v29 = vpack.c.bf16 %v1014_v53, %v1013_v52  ;;  %v484_v30 = vpop.f32.mrb[7].mxu1  ;;  %1024 = vmatpush3.bf16.msra.mxu1 %v576_v25 }
 0x244   :  { %v530_v54 = vpack.c.bf16 %v484_v30, %v481_v19  ;;  %1025 = vmatprep.subr.bf16.mxu1 %v577_v28 }
 0x245   :  { %v571_v57 = vadd.bf16 %v550_v55, %v531_v29  ;;  %v767_v29 = vpop.permute.xlu1 %766 }
 0x246   :  { %v570_v58 = vadd.bf16 %v546_v56, %v530_v54 }
 0x247   :  { %1026 = vmatpush3.bf16.msra.mxu1 %v577_v28  ;;  %v579_v63 = vmax.bf16 %v1205_v0, %v571_v57 }
 0x248   :  { %v1017_v59 = vpop.f32.mrb[8].mxu1  ;;  %v578_v60 = vmax.bf16 %v1205_v0, %v570_v58 }
 0x249   :  { %v497_v61 = vpop.f32.mrb[9].mxu1 }
 0x24a   :  { %v1018_v62 = vpop.f32.mrb[10].mxu1  ;;  %1027 = vmatprep.subr.bf16.mxu1 %v578_v60 }
 0x24b   :  { %v533_v1 = vpack.c.bf16 %v1018_v62, %v1017_v59  ;;  %v500_v2 = vpop.f32.mrb[11].mxu1  ;;  %1028 = vmatpush3.bf16.msra.mxu1 %v578_v60  ;;  %v771_v62 = vpop.permute.xlu0 %770 }
 0x24c   :  { %v532_v3 = vpack.c.bf16 %v500_v2, %v497_v61  ;;  %1029 = vmatprep.subr.bf16.mxu1 %v579_v63 }
 0x24d   :  { %v573_v6 = vadd.bf16 %v558_v4, %v533_v1  ;;  %v775_v1 = vpop.permute.xlu1 %774 }
 0x24e   :  { %v572_v7 = vadd.bf16 %v554_v5, %v532_v3 }
 0x24f   :  { %1030 = vmatpush3.bf16.msra.mxu1 %v579_v63  ;;  %v581_v14 = vmax.bf16 %v1205_v0, %v573_v6 }
 0x250   :  { %v1021_v8 = vpop.f32.mrb[12].mxu1  ;;  %v580_v10 = vmax.bf16 %v1205_v0, %v572_v7 }
 0x251   :  { %v513_v11 = vpop.f32.mrb[13].mxu1 }
 0x252   :  { %v1022_v12 = vpop.f32.mrb[14].mxu1  ;;  %1031 = vmatprep.subr.bf16.mxu1 %v580_v10 }
 0x253   :  { %v535_v16 = vpack.c.bf16 %v1022_v12, %v1021_v8  ;;  %v516_v17 = vpop.f32.mrb[15].mxu1  ;;  %1032 = vmatpush3.bf16.msra.mxu1 %v580_v10  ;;  %v779_v12 = vpop.permute.xlu0 %778 }
 0x254   :  { %v534_v18 = vpack.c.bf16 %v516_v17, %v513_v11  ;;  %1033 = vmatprep.subr.bf16.mxu1 %v581_v14 }
 0x255   :  { %v575_v22 = vadd.bf16 %v566_v20, %v535_v16  ;;  %v783_v16 = vpop.permute.xlu1 %782 }
 0x256   :  { %v574_v23 = vadd.bf16 %v562_v21, %v534_v18  ;;  %v801_v21 = vld [vmem:[%s1464_s4] sm:$0xf]  ;;  %s1177_s4 = scalar_lea.vmem %s861_s11, 32 }
 0x257   :  { %1034 = vmatpush3.bf16.msra.mxu1 %v581_v14  ;;  %v583_v26 = vmax.bf16 %v1205_v0, %v575_v22  ;;  %v845_v22 = vpop.permute.xlu0 %844  ;;  %p1179_p4 = scmp.lt.s32.totalorder %s1177_s4, %s1173_s12 }
 0x258   :  { %v582_v24 = vmax.bf16 %v1205_v0, %v574_v23 }
 0x259   :  { %p1180_p5 = por %p1179_p4, %p1178_p3 }
 0x25a   :  { %1035 = vmatprep.subr.bf16.mxu1 %v582_v24 }
 0x25b   :  { %1036 = vmatpush3.bf16.msra.mxu1 %v582_v24  ;;  %p1181_p6 = pnand %p1180_p5, %p1174_p2 }
 0x25c   :  { %1037 = vmatprep.subr.bf16.mxu1 %v583_v26 }
 0x25f   :  { %1038 = vmatpush3.bf16.msra.mxu1 %v583_v26 }
 0x262   :  { %1040 = vmatmul.mubr.bf16.vlgmr.msra.gmra.mrb[16].mxu1 %v1118_v27 }
 0x263   :  { %1043 = vmatprep.mubr.bf16.mxu1 %v1119_v31 }
 0x26a   :  { %1044 = vmatmul.mubr.bf16.gmra.mrb[20].mxu1 %v1120_v32 }
 0x26b   :  { %1047 = vmatprep.mubr.bf16.mxu1 %v1121_v33 }
 0x272   :  { %1048 = vmatmul.mubr.bf16.gmra.mrb[24].mxu1 %v1122_v34 }
 0x273   :  { %1051 = vmatprep.mubr.bf16.mxu1 %v1123_v35 }
 0x27a   :  { %1052 = vmatmul.mubr.bf16.gmra.mrb[28].mxu1 %v1124_v36 }
 0x335   :  { %v1041_v40 = vpop.f32.mrb[16].mxu1 }
 0x336   :  { %v682_v41 = vpop.f32.mrb[17].mxu1 }
 0x337   :  { %v1042_v42 = vpop.f32.mrb[18].mxu1 }
 0x338   :  { %v746_v44 = vpack.c.bf16 %v1042_v42, %v1041_v40  ;;  %v685_v45 = vpop.f32.mrb[19].mxu1 }
 0x339   :  { %v745_v46 = vpack.c.bf16 %v685_v45, %v682_v41 }
 0x33a   :  { %v786_v49 = vadd.bf16 %v759_v48, %v746_v44 }
 0x33b   :  { %v785_v47 = vadd.bf16 %v755_v43, %v745_v46 }
 0x33c   :  { %v794_v19 = vmax.bf16 %v1205_v0, %v786_v49 }
 0x33d   :  { %v793_v9 = vmax.bf16 %v1205_v0, %v785_v47  ;;  %v1045_v50 = vpop.f32.mrb[20].mxu1 }
 0x33e   :  { %v698_v51 = vpop.f32.mrb[21].mxu1 }
 0x33f   :  { %v1046_v13 = vpop.f32.mrb[22].mxu1  ;;  %1056 = vmatpush3.bf16.msra.mxu0 %v793_v9 }
 0x340   :  { %v748_v52 = vpack.c.bf16 %v1046_v13, %v1045_v50  ;;  %v701_v25 = vpop.f32.mrb[23].mxu1  ;;  %1057 = vmatprep.subr.bf16.mxu0 %v1208_v37 }
 0x341   :  { %v747_v53 = vpack.c.bf16 %v701_v25, %v698_v51 }
 0x342   :  { %v788_v30 = vadd.bf16 %v767_v29, %v748_v52 }
 0x343   :  { %v787_v28 = vadd.bf16 %v763_v15, %v747_v53  ;;  %1058 = vmatpush3.bf16.msra.mxu0 %v794_v19 }
 0x344   :  { %1059 = vmatprep.subr.bf16.mxu0 %v1208_v37  ;;  %v796_v60 = vmax.bf16 %v1205_v0, %v788_v30 }
 0x345   :  { %v795_v54 = vmax.bf16 %v1205_v0, %v787_v28  ;;  %v1049_v55 = vpop.f32.mrb[24].mxu1 }
 0x346   :  { %v714_v56 = vpop.f32.mrb[25].mxu1 }
 0x347   :  { %v1050_v57 = vpop.f32.mrb[26].mxu1  ;;  %1060 = vmatpush3.bf16.msra.mxu0 %v795_v54 }
 0x348   :  { %v750_v58 = vpack.c.bf16 %v1050_v57, %v1049_v55  ;;  %v717_v59 = vpop.f32.mrb[27].mxu1  ;;  %1061 = vmatprep.subr.bf16.mxu0 %v1208_v37 }
 0x349   :  { %v749_v61 = vpack.c.bf16 %v717_v59, %v714_v56 }
 0x34a   :  { %v790_v2 = vadd.bf16 %v775_v1, %v750_v58 }
 0x34b   :  { %v789_v63 = vadd.bf16 %v771_v62, %v749_v61  ;;  %1062 = vmatpush3.bf16.msra.mxu0 %v796_v60 }
 0x34c   :  { %1063 = vmatprep.subr.bf16.mxu0 %v1208_v37  ;;  %v798_v10 = vmax.bf16 %v1205_v0, %v790_v2 }
 0x34d   :  { %v797_v3 = vmax.bf16 %v1205_v0, %v789_v63  ;;  %v1053_v4 = vpop.f32.mrb[28].mxu1 }
 0x34e   :  { %v730_v5 = vpop.f32.mrb[29].mxu1 }
 0x34f   :  { %v1054_v6 = vpop.f32.mrb[30].mxu1  ;;  %1064 = vmatpush3.bf16.msra.mxu0 %v797_v3 }
 0x350   :  { %v752_v7 = vpack.c.bf16 %v1054_v6, %v1053_v4  ;;  %v733_v8 = vpop.f32.mrb[31].mxu1  ;;  %1065 = vmatprep.subr.bf16.mxu0 %v1208_v37 }
 0x351   :  { %v751_v11 = vpack.c.bf16 %v733_v8, %v730_v5 }
 0x352   :  { %v792_v17 = vadd.bf16 %v783_v16, %v752_v7 }
 0x353   :  { %v791_v14 = vadd.bf16 %v779_v12, %v751_v11  ;;  %1066 = vmatpush3.bf16.msra.mxu0 %v798_v10 }
 0x354   :  { %1067 = vmatprep.subr.bf16.mxu0 %v1208_v37  ;;  %v800_v20 = vmax.bf16 %v1205_v0, %v792_v17 }
 0x355   :  { %v799_v18 = vmax.bf16 %v1205_v0, %v791_v14 }
 0x357   :  { %1068 = vmatpush3.bf16.msra.mxu0 %v799_v18 }
 0x358   :  { %1069 = vmatprep.subr.bf16.mxu0 %v1208_v37 }
 0x35b   :  { %1070 = vmatpush3.bf16.msra.mxu0 %v800_v20 }
 0x35e   :  { %1072 = vmatmul.mubr.bf16.vlgmr.msra.gmra.mrb[16].mxu0 %v801_v21 }
 0x431   :  { %v836_v23 = vpop.f32.mrb[16].mxu0 }
 0x432   :  { %v847_v24 = vadd.f32 %v845_v22, %v836_v23  ;;  %v1073_v26 = vpop.f32.mrb[17].mxu0 }
 0x433   :  { %v839_v27 = vpop.f32.mrb[18].mxu0 }
 0x434   :  { %v848_v31 = vsub.f32 0.0, %v847_v24  ;;  %v1074_v32 = vpop.f32.mrb[19].mxu0 }
 0x436   :  { %v849_v33 = vmul.f32 1.442695, %v848_v31 }
 0x438   :  { %1125 = vpow2.f32 %v849_v33 }
 0x442   :  { %v1126_v34 = vpop.eup %1125 }
 0x443   :  { %v851_v35 = vadd.f32 1.0, %v1126_v34 }
 0x445   :  { %1127 = vrcp.f32 %v851_v35 }
 0x44f   :  { %v1128_v0 = vpop.eup %1127 }
 0x450   :  { %853 = vst [vmem:[#allocation7] sm:$0x1] %v1128_v0 }
 0x451   :  { %1184 = shalt.err (!%p1181_p6)
}
 0x452   :  { %s1185_s15 = scalar_lea.hbm %s1466_s6, 16 }
 0x453   :  { %p1186_p7 = scmp.ne.s32.totalorder %s1466_s6, %s1185_s15  ;;  %p1189_p8 = scmp.lt.u32.totalorder %s1185_s15, %s1466_s6 }
 0x455   :  { %p1191_p9 = pnand %p1189_p8, %p1186_p7 }
 0x457   :  { %1194 = shalt.err (!%p1191_p9)
}
 0x458   :  { %863 = dma.vmem_to_hbm [thread:$0]  %s861_s11, 16, %s1466_s6, [#allocation4]  }
 0x459   :  { %1199 = dma.done.wait [#allocation4], 16  }
 0x45a   :  { %1200 = vsyncadd [#allocation4], 4294967280 }
 0x45b   :  { %867 = vsyncpa [#allocation3], 1 }
 0x45c   :  { %868 = vsyncpa [#allocation6], 1 }
 0x45d   :  { %869 = vsyncpa [#allocation4], 1 }

</bundles_post_ra>
